<compile_context>
chip_gen: v6e
topology: v6e:2x2x1
jax: 0.10.0
libtpu: 0.0.40
codegen_flags: <defaults>
</compile_context>

<pallas_src>
import functools

import jax
import jax.numpy as jnp
from jax.experimental import pallas as pl
from jax.experimental.pallas import tpu as pltpu


# ----------------------------------------------------------------------------
# Kernel.  Grid = (N, pass, tile).  Channels on sublanes / H*W on lanes:
#   xh_ref : (Ch, T)    xl_ref : (C, T)    out_ref : (C, T)
#   wh (C, Ch), bh (C, 1), wt1t (C, Cb), bt1 (1, Cb), wt2 (C, Cb), bt2 (C, 1)
# Scratch: pool_acc (C, 1), tdw (C, 1), optional feat_cache (C, tiles*T).
# ----------------------------------------------------------------------------
def _topdown_fuse_kernel(hw_total, tile_hw, needs_mask, use_feat_cache,
                         xh_ref, xl_ref,
                         wh_ref, bh_ref,
                         wt1t_ref, bt1_ref, wt2_ref, bt2_ref,
                         out_ref,
                         pool_acc, tdw_ref, *maybe_cache):
    feat_cache = maybe_cache[0] if use_feat_cache else None

    p = pl.program_id(1)          # 0 = pooling pass, 1 = apply pass
    t = pl.program_id(2)
    nt = pl.num_programs(2)

    def cache_start():
        start = t * tile_hw
        if tile_hw % 128 == 0:
            start = pl.multiple_of(start, 128)
        return start

    def compute_feat():
        # bf16 (or f32) operands go straight to the MXU; accumulate in f32.
        f = jnp.dot(wh_ref[...], xh_ref[...],
                    preferred_element_type=jnp.float32) + bh_ref[...]
        return jnp.maximum(f, 0.0)                                   # (C, T) f32

    # --- pass 0: compute feat, accumulate the global average pool ------------
    @pl.when(jnp.logical_and(p == 0, t == 0))
    def _():
        pool_acc[...] = jnp.zeros_like(pool_acc)

    @pl.when(p == 0)
    def _():
        feat = compute_feat()
        if needs_mask:
            col = t * tile_hw + jax.lax.broadcasted_iota(jnp.int32, feat.shape, 1)
            feat_for_pool = jnp.where(col < hw_total, feat, 0.0)
        else:
            feat_for_pool = feat
        pool_acc[...] += jnp.sum(feat_for_pool, axis=1, keepdims=True)   # (C, 1)

        if use_feat_cache:
            feat_cache[:, pl.ds(cache_start(), tile_hw)] = feat.astype(feat_cache.dtype)

        # Keep the (revisited) output block defined during pass 0 so any future
        # revisit-flush semantics never write undefined data (benign; overwritten
        # by the real pass-1 store of the same block).
        @pl.when(t == 0)
        def _():
            out_ref[...] = feat.astype(out_ref.dtype)

    # --- end of pass 0: squeeze/excite gate (VPU broadcast + XLU reduce) ----
    @pl.when(jnp.logical_and(p == 0, t == nt - 1))
    def _():
        pooled = pool_acc[...] * jnp.float32(1.0 / hw_total)             # (C, 1)
        h = jnp.sum(wt1t_ref[...] * pooled, axis=0, keepdims=True) + bt1_ref[...]
        h = jnp.maximum(h, 0.0)                                          # (1, Cb)
        td = jnp.sum(wt2_ref[...] * h, axis=1, keepdims=True) + bt2_ref[...]
        tdw_ref[...] = jax.nn.sigmoid(td)                                # (C, 1)

    # --- pass 1: out = gate * xl + feat --------------------------------------
    @pl.when(p == 1)
    def _():
        if use_feat_cache:
            feat = feat_cache[:, pl.ds(cache_start(), tile_hw)].astype(jnp.float32)
        else:
            feat = compute_feat()
        out_ref[...] = (tdw_ref[...] * xl_ref[...] + feat).astype(out_ref.dtype)


# ----------------------------------------------------------------------------
# Helpers
# ----------------------------------------------------------------------------
def _tpu_vmem_capacity_bytes():
    try:
        return int(pltpu.get_tpu_info().vmem_capacity_bytes)
    except Exception:
        return 64 << 20   # conservative fallback: v7x per-TensorCore VMEM


def _pick_tile_hw(hw, ch, c, itemsize, vmem_cap):
    """Lane-dense (multiple-of-128) spatial tile; generation-aware single-copy
    working-set target (~4 MiB on 64-MiB-VMEM parts, ~8 MiB on 128-MiB parts)."""
    if hw <= 256:
        return hw
    target_bytes = (4 << 20) if vmem_cap <= (64 << 20) else (8 << 20)
    per_col = itemsize * (ch + 2 * c)             # xh + xl + out bytes per spatial col
    t = (min(max(target_bytes // per_col, 128), hw) // 128) * 128
    return max(int(t), 128)


# ----------------------------------------------------------------------------
# Wrapper: pure reshapes (no transposes), pallas_call with tiled two-pass grid.
# ----------------------------------------------------------------------------
@functools.partial(jax.jit, static_argnames=("tile_hw", "force_feat_cache"))
def topdown_global_fuse(xh_nchw, xl_nchw, params, tile_hw=None, force_feat_cache=None):
    N, Ch, H, W = xh_nchw.shape
    _, C, _, _ = xl_nchw.shape
    HW = H * W
    Cb = params["wt1t"].shape[1]

    # Compute dtype: feed bf16 straight to the MXU; anything else runs in f32.
    compute_dtype = jnp.bfloat16 if xh_nchw.dtype == jnp.bfloat16 else jnp.float32
    in_itemsize = jnp.dtype(compute_dtype).itemsize
    xl_itemsize = jnp.dtype(xl_nchw.dtype).itemsize

    vmem_cap = _tpu_vmem_capacity_bytes()

    # --- tiling (cdiv grid + masked last tile; no "must divide HW" requirement) ---
    if tile_hw is None:
        tile_hw = _pick_tile_hw(HW, Ch, C, in_itemsize, vmem_cap)
    tile_hw = min(int(tile_hw), HW)
    if tile_hw != HW and tile_hw % 128 != 0:
        tile_hw = HW
    num_tiles = int(pl.cdiv(HW, tile_hw))
    needs_mask = (HW % tile_hw) != 0

    # --- VMEM budgeting (generation-aware) -----------------------------------
    block_bytes = tile_hw * (Ch * in_itemsize + 2 * C * xl_itemsize)   # xh+xl+out, 1 copy
    param_bytes = C * Ch * in_itemsize + 4 * (C + 2 * C * Cb + Cb + C)
    cache_bytes = C * num_tiles * tile_hw * in_itemsize

    cache_budget = max(min(vmem_cap - (24 << 20), int(vmem_cap * 0.70)), 0)
    fits_cache = (cache_bytes + 2 * block_bytes + 2 * param_bytes + (2 << 20)) <= cache_budget
    use_feat_cache = fits_cache if force_feat_cache is None else bool(force_feat_cache)

    buf_factor = 3 if (not use_feat_cache and num_tiles >= 2) else 2
    needed = (buf_factor * block_bytes
              + (cache_bytes if use_feat_cache else 0)
              + 2 * param_bytes + (4 << 20))
    vmem_limit = int(min(max(needed, 32 << 20), max(vmem_cap - (4 << 20), 32 << 20)))

    # --- inputs: free reshapes, stay in NCHW, H*W on the lane axis ------------
    xh = xh_nchw.reshape(N, Ch, HW)
    if xh.dtype != compute_dtype:
        xh = xh.astype(compute_dtype)
    xl = xl_nchw.reshape(N, C, HW)
    wh = params["wh"].astype(compute_dtype)

    # --- BlockSpecs -----------------------------------------------------------
    def bcast(shape):
        # small parameter tensors: same full block at every grid step (stays resident)
        return pl.BlockSpec(shape, lambda n, p, t: (0, 0))

    def tile_spec(chan, index_map, extra_buf):
        shape = (pl.Squeezed(), chan, tile_hw)
        if extra_buf:
            try:
                return pl.BlockSpec(shape, index_map, pipeline_mode=pl.Buffered(3))
            except TypeError:   # older BlockSpec without pipeline_mode
                pass
        return pl.BlockSpec(shape, index_map)

    if use_feat_cache:
        # xh is only needed in pass 0; freeze its block index during pass 1 at the
        # last-fetched tile so no extra DMA is issued.
        xh_map = lambda n, p, t: (n, 0, t * (1 - p) + (num_tiles - 1) * p)
    else:
        xh_map = lambda n, p, t: (n, 0, t)
    # xl is only needed in pass 1 -> freeze (== prefetch tile 0) during pass 0.
    xl_map = lambda n, p, t: (n, 0, t * p)

    extra_buf = (not use_feat_cache) and num_tiles >= 2
    in_specs = [
        tile_spec(Ch, xh_map, extra_buf),
        tile_spec(C, xl_map, extra_buf),
        bcast((C, Ch)), bcast((C, 1)),
        bcast((C, Cb)), bcast((1, Cb)),
        bcast((C, Cb)), bcast((C, 1)),
    ]
    out_spec = pl.BlockSpec((pl.Squeezed(), C, tile_hw), lambda n, p, t: (n, 0, t * p))

    scratch = [pltpu.VMEM((C, 1), jnp.float32),    # pooled-sum accumulator
               pltpu.VMEM((C, 1), jnp.float32)]    # sigmoid gate
    if use_feat_cache:
        scratch.append(pltpu.VMEM((C, num_tiles * tile_hw), compute_dtype))

    grid_spec = pltpu.PrefetchScalarGridSpec(
        num_scalar_prefetch=0,
        grid=(N, 2, num_tiles),
        in_specs=in_specs,
        out_specs=out_spec,
        scratch_shapes=scratch,
    )

    xh_streams = 1 if use_feat_cache else 2
    cost = pl.CostEstimate(
        flops=int(2 * N * HW * Ch * C * xh_streams + 4 * N * C * Cb + 3 * N * C * HW),
        transcendentals=int(N * C),
        bytes_accessed=int(N * HW * (Ch * in_itemsize * xh_streams
                                     + 2 * C * xl_itemsize) + param_bytes),
    )

    out = pl.pallas_call(
        functools.partial(_topdown_fuse_kernel, HW, tile_hw, needs_mask, use_feat_cache),
        out_shape=jax.ShapeDtypeStruct((N, C, HW), xl_nchw.dtype),
        grid_spec=grid_spec,
        compiler_params=pltpu.CompilerParams(
            dimension_semantics=("parallel", "arbitrary", "arbitrary"),
            vmem_limit_bytes=vmem_limit),
        cost_estimate=cost,
    )(xh, xl,
      wh, params["bh"],
      params["wt1t"], params["bt1"], params["wt2"], params["bt2"])

    return out.reshape(N, C, H, W)


# ----------------------------------------------------------------------------
# Deterministic parameter construction (conv weights + inference-mode BN folded)
# ----------------------------------------------------------------------------
def _fold_conv_bn(w, b, gamma, beta, mean, var, eps=1e-5):
    # w: (Cout, Cin), b: (Cout,)
    scale = gamma / jnp.sqrt(var + eps)
    return (w * scale[:, None]).astype(jnp.float32), ((b - mean) * scale + beta).astype(jnp.float32)


def make_params(key, in_high, out_channels, r=4):
    C = out_channels
    Cb = int(out_channels // r)
    ks = jax.random.split(key, 12)

    def conv_bn(i, cin, cout):
        w = jax.random.normal(ks[i], (cout, cin), jnp.float32) * 0.1
        b = jax.random.normal(ks[i + 1], (cout,), jnp.float32) * 0.05
        gamma = 1.0 + 0.1 * jax.random.normal(ks[i + 2], (cout,), jnp.float32)
        beta = 0.1 * jax.random.normal(ks[i + 3], (cout,), jnp.float32)
        mean = jnp.zeros((cout,), jnp.float32)     # default running stats
        var = jnp.ones((cout,), jnp.float32)
        return _fold_conv_bn(w, b, gamma, beta, mean, var)

    wh, bh = conv_bn(0, in_high, C)     # (C, Ch), (C,)
    w1, b1 = conv_bn(4, C, Cb)          # (Cb, C), (Cb,)
    w2, b2 = conv_bn(8, Cb, C)          # (C, Cb), (C,)
    return dict(
        wh=wh, bh=bh[:, None],          # (C, Ch), (C, 1)
        wt1t=w1.T, bt1=b1[None, :],     # (C, Cb), (1, Cb)
        wt2=w2, bt2=b2[:, None],        # (C, Cb), (C, 1)
    )


# ----------------------------------------------------------------------------
# Pure-JAX reference (same folded params) for correctness checking
# ----------------------------------------------------------------------------
def reference(xh_nchw, xl_nchw, p):
    N, Ch, H, W = xh_nchw.shape
    C = xl_nchw.shape[1]
    xh = xh_nchw.reshape(N, Ch, H * W).astype(jnp.float32)
    xl = xl_nchw.reshape(N, C, H * W).astype(jnp.float32)
    feat = jax.nn.relu(jnp.einsum("ck,nkx->ncx", p["wh"], xh) + p["bh"][None])
    pooled = feat.mean(axis=2)                                       # (N, C)
    hid = jax.nn.relu(pooled @ p["wt1t"] + p["bt1"])                 # (N, Cb)
    tdw = jax.nn.sigmoid(hid @ p["wt2"].T + p["bt2"][:, 0][None])    # (N, C)
    out = tdw[:, :, None] * xl + feat
    return out.reshape(N, C, H, W)


if __name__ == "__main__":
    # Shapes consistent with the module: xh (N, in_high, H, W), xl (N, out, H, W).
    N, CH_HIGH, C_OUT, R = 2, 32, 16, 4

    key = jax.random.PRNGKey(0)
    k_xh, k_xl, k_p = jax.random.split(key, 3)
    params = make_params(k_p, CH_HIGH, C_OUT, r=R)

    def run_case(h, w, dtype, tol, **kw):
        xh = jax.random.normal(k_xh, (N, CH_HIGH, h, w), jnp.float32)
        xl = jax.random.normal(k_xl, (N, C_OUT, h, w), jnp.float32)
        ref = reference(xh, xl, params)
        out = jax.block_until_ready(
            topdown_global_fuse(xh.astype(dtype), xl.astype(dtype), params, **kw))
        assert out.shape == (N, C_OUT, h, w)
        assert out.dtype == dtype
        err = float(jnp.max(jnp.abs(out.astype(jnp.float32) - ref)))
        assert err <= tol, (h, w, str(dtype), kw, err)

    # 1) single-tile feat-cache path (auto tile).
    run_case(16, 16, jnp.float32, 1e-3)
    # 2) multi-tile feat-cache path (two exact 128-lane tiles).
    run_case(16, 16, jnp.float32, 1e-3, tile_hw=128)
    # 3) awkward spatial size: cdiv grid + masked last (partial) tile (H*W = 130).
    run_case(10, 13, jnp.float32, 1e-3, tile_hw=128)
    # 4) recompute fallback (no feat cache) with Buffered(3) streaming.
    run_case(10, 13, jnp.float32, 1e-3, tile_hw=128, force_feat_cache=False)
    # 5) bf16 operands straight to the MXU (f32 pool / gate math).
    run_case(16, 16, jnp.bfloat16, 6e-2)

    print("KERNEL_OK")
</pallas_src>

<mosaic_0001>
module attributes {stable_mosaic.version = 11 : i64} {
  func.func @_topdown_fuse_kernel(%arg0: i32, %arg1: i32, %arg2: i32, %arg3: memref<1x32x256xf32, #tpu.memory_space<vmem>>, %arg4: memref<1x16x256xf32, #tpu.memory_space<vmem>>, %arg5: memref<16x32xf32, #tpu.memory_space<vmem>>, %arg6: memref<16x1xf32, #tpu.memory_space<vmem>>, %arg7: memref<16x4xf32, #tpu.memory_space<vmem>>, %arg8: memref<1x4xf32, #tpu.memory_space<vmem>>, %arg9: memref<16x4xf32, #tpu.memory_space<vmem>>, %arg10: memref<16x1xf32, #tpu.memory_space<vmem>>, %arg11: memref<1x16x256xf32, #tpu.memory_space<vmem>>, %arg12: memref<16x1xf32, #tpu.memory_space<vmem>>, %arg13: memref<16x1xf32, #tpu.memory_space<vmem>>, %arg14: memref<16x256xf32, #tpu.memory_space<vmem>>) attributes {dimension_semantics = [#tpu.dimension_semantics<parallel>, #tpu.dimension_semantics<arbitrary>, #tpu.dimension_semantics<arbitrary>], iteration_bounds = array<i64: 2, 2, 1>, scalar_prefetch = 0 : i64, scratch_operands = 3 : i64, tpu.core_type = #tpu.core_type<tc>, window_params = [{transform_indices = @transform_0, window_bounds = array<i64: 1, 32, 256>}, {transform_indices = @transform_1, window_bounds = array<i64: 1, 16, 256>}, {pipeline_mode = #tpu.pipeline_mode<synchronous>, transform_indices = @transform_2, window_bounds = array<i64: 16, 32>}, {pipeline_mode = #tpu.pipeline_mode<synchronous>, transform_indices = @transform_3, window_bounds = array<i64: 16, 1>}, {pipeline_mode = #tpu.pipeline_mode<synchronous>, transform_indices = @transform_4, window_bounds = array<i64: 16, 4>}, {pipeline_mode = #tpu.pipeline_mode<synchronous>, transform_indices = @transform_5, window_bounds = array<i64: 1, 4>}, {pipeline_mode = #tpu.pipeline_mode<synchronous>, transform_indices = @transform_6, window_bounds = array<i64: 16, 4>}, {pipeline_mode = #tpu.pipeline_mode<synchronous>, transform_indices = @transform_7, window_bounds = array<i64: 16, 1>}, {transform_indices = @transform_8, window_bounds = array<i64: 1, 16, 256>}]} {
    %c0_i32 = arith.constant 0 : i32
    %0 = arith.cmpi eq, %arg1, %c0_i32 : i32
    %c0_i32_0 = arith.constant 0 : i32
    %1 = arith.cmpi eq, %arg2, %c0_i32_0 : i32
    %2 = arith.andi %0, %1 : i1
    %3 = arith.extui %2 : i1 to i32
    %c0_i32_1 = arith.constant 0 : i32
    %4 = arith.cmpi ne, %3, %c0_i32_1 : i32
    scf.if %4 {
      %cst = arith.constant 0.000000e+00 : f32
      %16 = vector.broadcast %cst : f32 to vector<16x1xf32>
      %c0 = arith.constant 0 : index
      %c0_8 = arith.constant 0 : index
      %17 = vector.load %arg12[%c0, %c0_8] : memref<16x1xf32, #tpu.memory_space<vmem>>, vector<16x1xf32>
      tpu.vector_store %arg12[%c0, %c0_8], %16 {strides = array<i32>} : memref<16x1xf32, #tpu.memory_space<vmem>>, vector<16x1xf32>,
    } else {
    }
    %c0_i32_2 = arith.constant 0 : i32
    %5 = arith.cmpi eq, %arg1, %c0_i32_2 : i32
    %6 = arith.extui %5 : i1 to i32
    %c0_i32_3 = arith.constant 0 : i32
    %7 = arith.cmpi ne, %6, %c0_i32_3 : i32
    scf.if %7 {
      %c0 = arith.constant 0 : index
      %c0_8 = arith.constant 0 : index
      %16 = vector.load %arg5[%c0, %c0_8] : memref<16x32xf32, #tpu.memory_space<vmem>>, vector<16x32xf32>
      %c0_9 = arith.constant 0 : index
      %c0_10 = arith.constant 0 : index
      %c0_11 = arith.constant 0 : index
      %17 = vector.load %arg3[%c0_9, %c0_10, %c0_11] : memref<1x32x256xf32, #tpu.memory_space<vmem>>, vector<1x32x256xf32>
      %18 = vector.shape_cast %17 : vector<1x32x256xf32> to vector<32x256xf32>
      %cst = arith.constant dense<0.000000e+00> : vector<16x256xf32>
      %19 = tpu.matmul %16, %18, %cst {dimension_numbers = #tpu.dot_dimension_numbers<[1], [0], [0], [1], [0, 0, 1, 1], [], []>} : vector<16x32xf32>, vector<32x256xf32>, vector<16x256xf32> -> vector<16x256xf32>
      %c0_12 = arith.constant 0 : index
      %c0_13 = arith.constant 0 : index
      %20 = vector.load %arg6[%c0_12, %c0_13] : memref<16x1xf32, #tpu.memory_space<vmem>>, vector<16x1xf32>
      %21 = vector.broadcast %20 : vector<16x1xf32> to vector<16x256xf32>
      %22 = arith.addf %19, %21 : vector<16x256xf32>
      %cst_14 = arith.constant 0.000000e+00 : f32
      %23 = vector.broadcast %cst_14 : f32 to vector<16x256xf32>
      %24 = arith.maximumf %22, %23 : vector<16x256xf32>
      %c0_15 = arith.constant 0 : index
      %c0_16 = arith.constant 0 : index
      %25 = vector.load %arg12[%c0_15, %c0_16] : memref<16x1xf32, #tpu.memory_space<vmem>>, vector<16x1xf32>
      %cst_17 = arith.constant dense<0.000000e+00> : vector<16xf32>
      %26 = vector.multi_reduction <add>, %24, %cst_17 [1] : vector<16x256xf32> to vector<16xf32>
      %27 = vector.shape_cast %26 : vector<16xf32> to vector<16x1xf32>
      %28 = arith.addf %25, %27 : vector<16x1xf32>
      %c0_18 = arith.constant 0 : index
      %c0_19 = arith.constant 0 : index
      %29 = vector.load %arg12[%c0_18, %c0_19] : memref<16x1xf32, #tpu.memory_space<vmem>>, vector<16x1xf32>
      tpu.vector_store %arg12[%c0_18, %c0_19], %28 {strides = array<i32>} : memref<16x1xf32, #tpu.memory_space<vmem>>, vector<16x1xf32>,
      %c256_i32 = arith.constant 256 : i32
      %30 = arith.muli %arg2, %c256_i32 : i32
      %31 = tpu.assume_multiple %30, 128 : i32
      %c0_20 = arith.constant 0 : index
      %32 = arith.index_cast %31 : i32 to index
      %33 = vector.load %arg14[%c0_20, %32] : memref<16x256xf32, #tpu.memory_space<vmem>>, vector<16x256xf32>
      tpu.vector_store %arg14[%c0_20, %32], %24 {strides = array<i32>} : memref<16x256xf32, #tpu.memory_space<vmem>>, vector<16x256xf32>,
      %c0_i32_21 = arith.constant 0 : i32
      %34 = arith.cmpi eq, %arg2, %c0_i32_21 : i32
      %35 = arith.extui %34 : i1 to i32
      %c0_i32_22 = arith.constant 0 : i32
      %36 = arith.cmpi ne, %35, %c0_i32_22 : i32
      scf.if %36 {
        %c0_23 = arith.constant 0 : index
        %c0_24 = arith.constant 0 : index
        %c0_25 = arith.constant 0 : index
        %37 = vector.load %arg11[%c0_23, %c0_24, %c0_25] : memref<1x16x256xf32, #tpu.memory_space<vmem>>, vector<1x16x256xf32>
        %38 = vector.shape_cast %37 : vector<1x16x256xf32> to vector<16x256xf32>
        %39 = vector.shape_cast %24 : vector<16x256xf32> to vector<1x16x256xf32>
        tpu.vector_store %arg11[%c0_23, %c0_24, %c0_25], %39 {strides = array<i32>} : memref<1x16x256xf32, #tpu.memory_space<vmem>>, vector<1x16x256xf32>,
      } else {
      }
    } else {
    }
    %c0_i32_4 = arith.constant 0 : i32
    %8 = arith.cmpi eq, %arg1, %c0_i32_4 : i32
    %c0_i32_5 = arith.constant 0 : i32
    %9 = arith.cmpi eq, %arg2, %c0_i32_5 : i32
    %10 = arith.andi %8, %9 : i1
    %11 = arith.extui %10 : i1 to i32
    %c0_i32_6 = arith.constant 0 : i32
    %12 = arith.cmpi ne, %11, %c0_i32_6 : i32
    scf.if %12 {
      %c0 = arith.constant 0 : index
      %c0_8 = arith.constant 0 : index
      %16 = vector.load %arg12[%c0, %c0_8] : memref<16x1xf32, #tpu.memory_space<vmem>>, vector<16x1xf32>
      %cst = arith.constant 3.906250e-03 : f32
      %17 = vector.broadcast %cst : f32 to vector<16x1xf32>
      %18 = arith.mulf %16, %17 : vector<16x1xf32>
      %c0_9 = arith.constant 0 : index
      %c0_10 = arith.constant 0 : index
      %19 = vector.load %arg7[%c0_9, %c0_10] : memref<16x4xf32, #tpu.memory_space<vmem>>, vector<16x4xf32>
      %20 = vector.broadcast %18 : vector<16x1xf32> to vector<16x4xf32>
      %21 = arith.mulf %19, %20 : vector<16x4xf32>
      %cst_11 = arith.constant dense<0.000000e+00> : vector<4xf32>
      %22 = vector.multi_reduction <add>, %21, %cst_11 [0] : vector<16x4xf32> to vector<4xf32>
      %23 = vector.shape_cast %22 : vector<4xf32> to vector<1x4xf32>
      %c0_12 = arith.constant 0 : index
      %c0_13 = arith.constant 0 : index
      %24 = vector.load %arg8[%c0_12, %c0_13] : memref<1x4xf32, #tpu.memory_space<vmem>>, vector<1x4xf32>
      %25 = arith.addf %23, %24 : vector<1x4xf32>
      %cst_14 = arith.constant 0.000000e+00 : f32
      %26 = vector.broadcast %cst_14 : f32 to vector<1x4xf32>
      %27 = arith.maximumf %25, %26 : vector<1x4xf32>
      %c0_15 = arith.constant 0 : index
      %c0_16 = arith.constant 0 : index
      %28 = vector.load %arg9[%c0_15, %c0_16] : memref<16x4xf32, #tpu.memory_space<vmem>>, vector<16x4xf32>
      %29 = vector.broadcast %27 : vector<1x4xf32> to vector<16x4xf32>
      %30 = arith.mulf %28, %29 : vector<16x4xf32>
      %cst_17 = arith.constant dense<0.000000e+00> : vector<16xf32>
      %31 = vector.multi_reduction <add>, %30, %cst_17 [1] : vector<16x4xf32> to vector<16xf32>
      %32 = vector.shape_cast %31 : vector<16xf32> to vector<16x1xf32>
      %c0_18 = arith.constant 0 : index
      %c0_19 = arith.constant 0 : index
      %33 = vector.load %arg10[%c0_18, %c0_19] : memref<16x1xf32, #tpu.memory_space<vmem>>, vector<16x1xf32>
      %34 = arith.addf %32, %33 : vector<16x1xf32>
      %35 = arith.negf %34 : vector<16x1xf32>
      %36 = math.exp %35 : vector<16x1xf32>
      %cst_20 = arith.constant 1.000000e+00 : f32
      %37 = vector.broadcast %cst_20 : f32 to vector<16x1xf32>
      %38 = arith.addf %37, %36 : vector<16x1xf32>
      %39 = arith.divf %37, %38 : vector<16x1xf32>
      %c0_21 = arith.constant 0 : index
      %c0_22 = arith.constant 0 : index
      %40 = vector.load %arg13[%c0_21, %c0_22] : memref<16x1xf32, #tpu.memory_space<vmem>>, vector<16x1xf32>
      tpu.vector_store %arg13[%c0_21, %c0_22], %39 {strides = array<i32>} : memref<16x1xf32, #tpu.memory_space<vmem>>, vector<16x1xf32>,
    } else {
    }
    %c1_i32 = arith.constant 1 : i32
    %13 = arith.cmpi eq, %arg1, %c1_i32 : i32
    %14 = arith.extui %13 : i1 to i32
    %c0_i32_7 = arith.constant 0 : i32
    %15 = arith.cmpi ne, %14, %c0_i32_7 : i32
    scf.if %15 {
      %c256_i32 = arith.constant 256 : i32
      %16 = arith.muli %arg2, %c256_i32 : i32
      %17 = tpu.assume_multiple %16, 128 : i32
      %c0 = arith.constant 0 : index
      %18 = arith.index_cast %17 : i32 to index
      %19 = vector.load %arg14[%c0, %18] : memref<16x256xf32, #tpu.memory_space<vmem>>, vector<16x256xf32>
      %c0_8 = arith.constant 0 : index
      %c0_9 = arith.constant 0 : index
      %20 = vector.load %arg13[%c0_8, %c0_9] : memref<16x1xf32, #tpu.memory_space<vmem>>, vector<16x1xf32>
      %c0_10 = arith.constant 0 : index
      %c0_11 = arith.constant 0 : index
      %c0_12 = arith.constant 0 : index
      %21 = vector.load %arg4[%c0_10, %c0_11, %c0_12] : memref<1x16x256xf32, #tpu.memory_space<vmem>>, vector<1x16x256xf32>
      %22 = vector.shape_cast %21 : vector<1x16x256xf32> to vector<16x256xf32>
      %23 = vector.broadcast %20 : vector<16x1xf32> to vector<16x256xf32>
      %24 = arith.mulf %23, %22 : vector<16x256xf32>
      %25 = arith.addf %24, %19 : vector<16x256xf32>
      %c0_13 = arith.constant 0 : index
      %c0_14 = arith.constant 0 : index
      %c0_15 = arith.constant 0 : index
      %26 = vector.load %arg11[%c0_13, %c0_14, %c0_15] : memref<1x16x256xf32, #tpu.memory_space<vmem>>, vector<1x16x256xf32>
      %27 = vector.shape_cast %26 : vector<1x16x256xf32> to vector<16x256xf32>
      %28 = vector.shape_cast %25 : vector<16x256xf32> to vector<1x16x256xf32>
      tpu.vector_store %arg11[%c0_13, %c0_14, %c0_15], %28 {strides = array<i32>} : memref<1x16x256xf32, #tpu.memory_space<vmem>>, vector<1x16x256xf32>,
    } else {
    }
    return
  }
  func.func @transform_0(%arg0: i32, %arg1: i32, %arg2: i32) -> (i32, i32, i32) {
    %c1_i32 = arith.constant 1 : i32
    %0 = arith.subi %c1_i32, %arg1 : i32
    %1 = arith.muli %arg2, %0 : i32
    %c0_i32 = arith.constant 0 : i32
    %2 = arith.muli %c0_i32, %arg1 : i32
    %3 = arith.addi %1, %2 : i32
    %c0_i32_0 = arith.constant 0 : i32
    %c0_i32_1 = arith.constant 0 : i32
    return %arg0, %c0_i32_0, %3 : i32, i32, i32
  }
  func.func @transform_1(%arg0: i32, %arg1: i32, %arg2: i32) -> (i32, i32, i32) {
    %0 = arith.muli %arg2, %arg1 : i32
    %c0_i32 = arith.constant 0 : i32
    %c0_i32_0 = arith.constant 0 : i32
    return %arg0, %c0_i32, %0 : i32, i32, i32
  }
  func.func @transform_2(%arg0: i32, %arg1: i32, %arg2: i32) -> (i32, i32) {
    %c0_i32 = arith.constant 0 : i32
    %c0_i32_0 = arith.constant 0 : i32
    %c0_i32_1 = arith.constant 0 : i32
    return %c0_i32, %c0_i32_0 : i32, i32
  }
  func.func @transform_3(%arg0: i32, %arg1: i32, %arg2: i32) -> (i32, i32) {
    %c0_i32 = arith.constant 0 : i32
    %c0_i32_0 = arith.constant 0 : i32
    %c0_i32_1 = arith.constant 0 : i32
    return %c0_i32, %c0_i32_0 : i32, i32
  }
  func.func @transform_4(%arg0: i32, %arg1: i32, %arg2: i32) -> (i32, i32) {
    %c0_i32 = arith.constant 0 : i32
    %c0_i32_0 = arith.constant 0 : i32
    %c0_i32_1 = arith.constant 0 : i32
    return %c0_i32, %c0_i32_0 : i32, i32
  }
  func.func @transform_5(%arg0: i32, %arg1: i32, %arg2: i32) -> (i32, i32) {
    %c0_i32 = arith.constant 0 : i32
    %c0_i32_0 = arith.constant 0 : i32
    %c0_i32_1 = arith.constant 0 : i32
    return %c0_i32, %c0_i32_0 : i32, i32
  }
  func.func @transform_6(%arg0: i32, %arg1: i32, %arg2: i32) -> (i32, i32) {
    %c0_i32 = arith.constant 0 : i32
    %c0_i32_0 = arith.constant 0 : i32
    %c0_i32_1 = arith.constant 0 : i32
    return %c0_i32, %c0_i32_0 : i32, i32
  }
  func.func @transform_7(%arg0: i32, %arg1: i32, %arg2: i32) -> (i32, i32) {
    %c0_i32 = arith.constant 0 : i32
    %c0_i32_0 = arith.constant 0 : i32
    %c0_i32_1 = arith.constant 0 : i32
    return %c0_i32, %c0_i32_0 : i32, i32
  }
  func.func @transform_8(%arg0: i32, %arg1: i32, %arg2: i32) -> (i32, i32, i32) {
    %0 = arith.muli %arg2, %arg1 : i32
    %c0_i32 = arith.constant 0 : i32
    %c0_i32_0 = arith.constant 0 : i32
    return %arg0, %c0_i32, %0 : i32, i32, i32
  }
}

</mosaic_0001>

<bundles_post_ra>
// kernel: topdown_global_fuse.1
= control target key start
LH: loop header
LB: loop body
LE: loop exit
PB: predicated region body
PF: predicated region fallthrough
CT: control target
= control target key end

     0   :  { %s968_s27 = smov 0   ;;  %s970_s28 = smov 0   ;;  %s1084_s0 = inlined_call_operand.vmem [shape: f32[2,32,256], index: 0, kind: input, shape index: {}]   ;;  %s1085_s1 = inlined_call_operand.vmem [shape: f32[2,16,256], index: 1, kind: input, shape index: {}]   ;;  %s1086_s2 = inlined_call_operand.vmem [shape: f32[16,32], index: 2, kind: input, shape index: {}]   ;;  %s1087_s3 = inlined_call_operand.vmem [shape: f32[16,1], index: 3, kind: input, shape index: {}]   ;;  %s1088_s4 = inlined_call_operand.vmem [shape: f32[16,4], index: 4, kind: input, shape index: {}]   ;;  %s1089_s5 = inlined_call_operand.vmem [shape: f32[1,4], index: 5, kind: input, shape index: {}]   ;;  %s1090_s6 = inlined_call_operand.vmem [shape: f32[16,4], index: 6, kind: input, shape index: {}]   ;;  %s1091_s7 = inlined_call_operand.vmem [shape: f32[16,1], index: 7, kind: input, shape index: {}]   ;;  %s1092_s8 = inlined_call_operand.vmem [shape: f32[2,16,256], index: 8, kind: output, shape index: {}]  }
   0x1   :  { %s972_s29 = smov 0   ;;  %s974_s30 = smov 0  }
   0x2   :  { %s976_s9 = smov 0  }
   0x3 LB: > { %s33_s10 = sadd.s32 1, %s908_s29  ;;  %s37_s11 = sadd.s32 1, %s912_s30  ;;  %s916_s9 = sphi %s976_s9, %s18_s9   ;;  %s912_s30 = sphi %s974_s30, %s1096_s30   ;;  %s908_s29 = sphi %s972_s29, %s1095_s29   ;;  %s904_s28 = sphi %s970_s28, %s1094_s28   ;;  %s900_s27 = sphi %s968_s27, %s1093_s27  }
   0x4   : > { %p35_p0 = scmp.ge.s32.totalorder %s33_s10, 2  ;;  %p794_p1 = scmp.ge.s32.totalorder %s916_s9, 1 }
   0x5   : > { %p321_p2 = scmp.lt.s32.totalorder %s916_s9, 5 }
   0x6   : > { %s1098_s10 = smov (%p35_p0, %s33_s10), 0  ;;  %s1100_s11 = smov (!%p35_p0, %s37_s11), %s912_s30 }
   0x7   : > { %p322_p3 = pnand %p794_p1, %p321_p2  ;;  %p39_p4 = scmp.ge.s32.totalorder %s1100_s11, 2 }
   0x8   : > { %p379_p5 = scmp.lt.s32.totalorder (!%p322_p3), %s904_s28, 1  ;;  %p414_p6 = scmp.eq.s32.totalorder (!%p322_p3), %s900_s27, 0 }
   0x9   : > { %s1102_s11 = smov (%p39_p4, %s1100_s11), 0  ;;  %325 = sbr.rel (%p322_p3) target bundleno = 860 (0x35c), region = 52 }
   0xe   : > { %s1104_s28 = smov (!%p379_p5, %s904_s28), 1  ;;  %419 = sbr.rel (!%p414_p6) target bundleno = 19 (0x13), region = 56  ;;  %vm420_vm0 = vcmask (%p414_p6), 7168   ;;  %v918_v0 = vmov (%p414_p6), 0.0  }
   0xf   : > { %s810_s12 = sshll.u32 %s1104_s28, 6  ;;  %s811_s13 = sshll.u32 %s1104_s28, 5  ;;  %421 = vst.msk [vmem:[#allocation2] sm:$0xff] (%p414_p6), %vm420_vm0, %v918_v0  ;;  %422 = vst.msk [vmem:[#allocation2 + $0x8] sm:$0xff] (%p414_p6), %vm420_vm0, %v918_v0 }
  0x10   : > { %s386_s16 = scalar_lea.vmem %s1084_s0, %s810_s12  ;;  %s1007_s19 = scalar_lea.vmem %s1085_s1, %s811_s13 }
  0x11   : > { %s1012_s22 = scalar_lea.vmem %s1092_s8, %s811_s13 }
  0x13 PF: > { %p802_p7 = scmp.ne.s32.totalorder %s900_s27, 0 }
  0x15   : > { %425 = sbr.rel (%p802_p7) target bundleno = 382 (0x17e), region = 60 }
  0x1a   : > { %v435_v1 = vld [vmem:[%s386_s16 + $0x38] sm:$0xff]  ;;  %v434_v2 = vld [vmem:[%s386_s16 + $0x30] sm:$0xff]  ;;  %v433_v3 = vld [vmem:[%s386_s16 + $0x28] sm:$0xff]  ;;  %vm448_vm1 = vcmask 261120   ;;  %v919_v11 = vmov 0.0   ;;  %v920_v13 = vmov 0  }
  0x1b   : > { %479 = vmatprep.subr.mxu0 %v435_v1  ;;  %814 = vmatprep.subr.mxu1 %v435_v1  ;;  %v432_v4 = vld [vmem:[%s386_s16 + $0x20] sm:$0xff]  ;;  %v431_v5 = vld [vmem:[%s386_s16 + $0x18] sm:$0xff]  ;;  %v430_v6 = vld [vmem:[%s386_s16 + $0x10] sm:$0xff]  ;;  %vm546_vm2 = vcmask 7168  }
  0x1c   : > { %480 = vmatpush1.msra.mxu0 %v434_v2  ;;  %818 = vmatpush1.msra.mxu1 %v434_v2  ;;  %v429_v7 = vld [vmem:[%s386_s16 + $0x8] sm:$0xff]  ;;  %v428_v8 = vld [vmem:[%s386_s16] sm:$0xff] }
  0x1d   : > { %481 = vmatprep.subr.mxu0 %v433_v3  ;;  %815 = vmatprep.subr.mxu1 %v433_v3  ;;  %v426_v9 = vld [vmem:[%s1086_s2] sm:$0xff]  ;;  %v427_v10 = vld [vmem:[%s1086_s2 + $0x8] sm:$0xff] }
  0x1e   : > { %482 = vmatpush1.msra.mxu0 %v432_v4  ;;  %819 = vmatpush1.msra.mxu1 %v432_v4  ;;  %v436_v12 = vld [vmem:[%s1087_s3] sm:$0xff]  ;;  %v437_v14 = vld [vmem:[%s1087_s3 + $0x8] sm:$0xff] }
  0x1f   : > { %483 = vmatprep.subr.mxu0 %v431_v5  ;;  %816 = vmatprep.subr.mxu1 %v431_v5  ;;  %v536_v31 = vld [vmem:[#allocation2] sm:$0xff]  ;;  %v537_v34 = vld [vmem:[#allocation2 + $0x8] sm:$0xff] }
  0x20   : > { %484 = vmatpush1.msra.mxu0 %v430_v6  ;;  %820 = vmatpush1.msra.mxu1 %v430_v6 }
  0x21   : > { %485 = vmatprep.subr.mxu0 %v429_v7  ;;  %817 = vmatprep.subr.mxu1 %v429_v7 }
  0x22   : > { %486 = vmatpush1.msra.mxu0 %v428_v8  ;;  %821 = vmatpush1.msra.mxu1 %v428_v8 }
  0x23   : > { %519 = vmatprep.mubr.f32.mxu0 %v919_v11  ;;  %525 = vmatprep.mubr.f32.mxu1 %v919_v11 }
  0x24   : > { %803 = vmatmul.mubr.msk.f32.vlgmr.msra.gmra.mxu0 %vm448_vm1, %v426_v9  ;;  %804 = vmatmul.mubr.msk.f32.vlgmr.msra.gmra.mxu1 %vm448_vm1, %v427_v10 }
  0x25   : > { %867 = vset.pattern.permute.xlu0 %v920_v13 }
  0x26   : > { %440 = vperm.xlu0 %867, %v436_v12  }
  0x2a   : > { %445 = vperm.xlu0 %867, %v437_v14  }
  0xa1   : > { %v441_v15 = vpop.permute.xlu0 %440 }
  0xa5   : > { %v446_v16 = vpop.permute.xlu0 %445 }
  0xe4   : > { %v521_v17 = vpop.f32.mrf.mxu0  ;;  %v527_v18 = vpop.f32.mrf.mxu1 }
  0xe5   : > { %v522_v19 = vadd.f32 %v521_v17, %v441_v15  ;;  %v528_v20 = vadd.f32 %v527_v18, %v446_v16 }
  0xe6   : > { %v523_v21 = vpop.f32.mrf.mxu0  ;;  %v529_v22 = vpop.f32.mrf.mxu1 }
  0xe7   : > { %v532_v23 = vmax.f32 %v522_v19, 0.0  ;;  %v534_v24 = vmax.f32 %v528_v20, 0.0  ;;  %v524_v25 = vadd.f32 %v523_v21, %v441_v15  ;;  %v530_v26 = vadd.f32 %v529_v22, %v446_v16 }
  0xe9   : > { %554 = vst [vmem:[#allocation4 + $0x10] sm:$0xff] %v532_v23  ;;  %561 = vst [vmem:[%s1012_s22] sm:$0xff] %v532_v23  ;;  %v533_v27 = vmax.f32 %v524_v25, 0.0  ;;  %v535_v28 = vmax.f32 %v530_v26, 0.0 }
  0xea   : > { %556 = vst [vmem:[#allocation4 + $0x18] sm:$0xff] %v534_v24  ;;  %563 = vst [vmem:[%s1012_s22 + $0x10] sm:$0xff] %v534_v24 }
  0xeb   : > { %555 = vst [vmem:[#allocation4] sm:$0xff] %v533_v27  ;;  %562 = vst [vmem:[%s1012_s22 + $0x8] sm:$0xff] %v533_v27  ;;  %v538_v29 = vadd.f32 %v533_v27, %v532_v23  ;;  %v541_v30 = vadd.f32 %v535_v28, %v534_v24 }
  0xec   : > { %557 = vst [vmem:[#allocation4 + $0x8] sm:$0xff] %v535_v28  ;;  %564 = vst [vmem:[%s1012_s22 + $0x18] sm:$0xff] %v535_v28 }
  0xed   : > { %539 = vadd.xlane.f32.xlu1 %v538_v29 }
  0xf1   : > { %542 = vadd.xlane.f32.xlu1 %v541_v30 }
 0x176   : > { %v540_v32 = vpop.xlane.xlu1 %539 }
 0x177   : > { %v544_v33 = vadd.f32 %v540_v32, %v536_v31 }
 0x179   : > { %547 = vst.msk [vmem:[#allocation2] sm:$0xff] %vm546_vm2, %v544_v33 }
 0x17a   : > { %v543_v35 = vpop.xlane.xlu1 %542 }
 0x17b   : > { %v545_v36 = vadd.f32 %v543_v35, %v537_v34 }
 0x17d   : > { %548 = vst.msk [vmem:[#allocation2 + $0x8] sm:$0xff] %vm546_vm2, %v545_v36 }
 0x17e PF: > { %566 = sbr.rel (!%p414_p6) target bundleno = 718 (0x2ce), region = 68  ;;  %v921_v39 = vmov (%p414_p6), 0   ;;  %v571_v42 = vld [vmem:[%s1088_s4] sm:$0xff] (%p414_p6)  ;;  %v572_v44 = vld [vmem:[%s1088_s4 + $0x8] sm:$0xff] (%p414_p6)  ;;  %vm585_vm3 = vcmask (%p414_p6), 31744   ;;  %v600_v54 = vlaneseq (%p414_p6)  ;;  %vm628_vm4 = vcmask (%p414_p6), 7168  }
 0x17f   : > { %868 = vset.pattern.permute.xlu0 (%p414_p6), %v921_v39  ;;  %v595_v58 = vld [vmem:[%s1089_s5] sm:$0x1] (%p414_p6)  ;;  %v599_v1 = vld [vmem:[%s1090_s6 + $0x8] sm:$0xff] (%p414_p6) }
 0x180   : > { %v567_v37 = vld [vmem:[#allocation2] sm:$0xff] (%p414_p6)  ;;  %v601_v57 = vshrl.u32 (%p414_p6), %v600_v54, 7  ;;  %v613_v9 = vld [vmem:[%s1091_s7 + $0x8] sm:$0xff] (%p414_p6) }
 0x181   : > { %v569_v40 = vmul.f32 (%p414_p6), 0.00390625, %v567_v37  ;;  %v598_v63 = vld [vmem:[%s1090_s6] sm:$0xff] (%p414_p6) }
 0x182   : > { %v602_v61 = vsub.s32 (%p414_p6), 0, %v601_v57  ;;  %v612_v6 = vld [vmem:[%s1091_s7] sm:$0xff] (%p414_p6) }
 0x183   : > { %575 = vperm.xlu0 %868, %v569_v40  }
 0x184   : > { %v568_v38 = vld [vmem:[#allocation2 + $0x8] sm:$0xff] }
 0x185   : > { %v570_v41 = vmul.f32 0.00390625, %v568_v38 }
 0x187   : > { %580 = vperm.xlu0 %868, %v570_v41  }
 0x1fe   : > { %v576_v43 = vpop.permute.xlu0 %575 }
 0x1ff   : > { %v583_v45 = vmul.f32 %v576_v43, %v571_v42 }
 0x201   : > { %v586_v48 = vsel %vm585_vm3, %v583_v45, 0.0 }
 0x202   : > { %v581_v46 = vpop.permute.xlu0 %580 }
 0x203   : > { %v584_v47 = vmul.f32 %v581_v46, %v572_v44 }
 0x205   : > { %v587_v49 = vsel %vm585_vm3, %v584_v47, 0.0 }
 0x206   : > { %v588_v50 = vadd.f32 %v587_v49, %v586_v48 }
 0x208   : > { %v589_v51 = vrot.slane %v588_v50, 4 }
 0x20a   : > { %v590_v52 = vadd.f32 %v589_v51, %v588_v50 }
 0x20c   : > { %v591_v53 = vrot.slane %v590_v52, 2 }
 0x20e   : > { %v592_v55 = vadd.f32 %v591_v53, %v590_v52 }
 0x210   : > { %v593_v56 = vrot.slane %v592_v55, 1 }
 0x212   : > { %v594_v59 = vadd.f32 %v593_v56, %v592_v55 }
 0x214   : > { %v596_v60 = vadd.f32 %v595_v58, %v594_v59 }
 0x216   : > { %v597_v62 = vmax.f32 %v596_v60, 0.0 }
 0x218   : > { %v603_v0 = vrot.slane %v597_v62, %v602_v61 }
 0x21a   : > { %v604_v2 = vmul.f32 %v603_v0, %v598_v63  ;;  %v605_v4 = vmul.f32 %v603_v0, %v599_v1 }
 0x21c   : > { %v606_v3 = vsel %vm585_vm3, %v604_v2, 0.0  ;;  %v609_v5 = vsel %vm585_vm3, %v605_v4, 0.0 }
 0x21d   : > { %607 = vadd.xlane.f32.xlu1 %v606_v3 }
 0x221   : > { %610 = vadd.xlane.f32.xlu1 %v609_v5 }
 0x2a6   : > { %v608_v7 = vpop.xlane.xlu1 %607 }
 0x2a7   : > { %v614_v8 = vadd.f32 %v612_v6, %v608_v7 }
 0x2a9   : > { %v805_v10 = vmul.f32 -1.442695, %v614_v8 }
 0x2aa   : > { %v611_v11 = vpop.xlane.xlu1 %610 }
 0x2ab   : > { %869 = vpow2.f32 %v805_v10  ;;  %v615_v12 = vadd.f32 %v613_v9, %v611_v11 }
 0x2ad   : > { %v806_v13 = vmul.f32 -1.442695, %v615_v12 }
 0x2af   : > { %871 = vpow2.f32 %v806_v13 }
 0x2b8   : > { %v870_v14 = vpop.eup %869 }
 0x2b9   : > { %v622_v15 = vadd.f32 1.0, %v870_v14 }
 0x2bb   : > { %873 = vrcp.f32 %v622_v15 }
 0x2bc   : > { %v872_v16 = vpop.eup %871 }
 0x2bd   : > { %v623_v17 = vadd.f32 1.0, %v872_v16 }
 0x2bf   : > { %875 = vrcp.f32 %v623_v17 }
 0x2c8   : > { %v874_v18 = vpop.eup %873 }
 0x2c9   : > { %629 = vst.msk [vmem:[#allocation3] sm:$0xff] %vm628_vm4, %v874_v18 }
 0x2cc   : > { %v876_v19 = vpop.eup %875 }
 0x2cd   : > { %630 = vst.msk [vmem:[#allocation3 + $0x8] sm:$0xff] %vm628_vm4, %v876_v19 }
 0x2ce PF: > { %p807_p8 = scmp.ne.s32.totalorder %s900_s27, 1 }
 0x2d0   : > { %634 = sbr.rel (%p807_p8) target bundleno = 860 (0x35c), region = 72 }
 0x2d5   : > { %v644_v20 = vld [vmem:[#allocation3] sm:$0xff]  ;;  %v922_v21 = vmov 0   ;;  %v645_v22 = vld [vmem:[#allocation3 + $0x8] sm:$0xff]  ;;  %v646_v23 = vld [vmem:[%s1007_s19] sm:$0xff] }
 0x2d6   : > { %877 = vset.pattern.permute.xlu0 %v922_v21  ;;  %v647_v24 = vld [vmem:[%s1007_s19 + $0x8] sm:$0xff]  ;;  %v640_v26 = vld [vmem:[#allocation4 + $0x10] sm:$0xff]  ;;  %v641_v27 = vld [vmem:[#allocation4] sm:$0xff] }
 0x2d7   : > { %652 = vperm.xlu0 %877, %v644_v20   ;;  %v648_v30 = vld [vmem:[%s1007_s19 + $0x10] sm:$0xff]  ;;  %v649_v31 = vld [vmem:[%s1007_s19 + $0x18] sm:$0xff]  ;;  %v643_v36 = vld [vmem:[#allocation4 + $0x8] sm:$0xff] }
 0x2d8   : > { %v642_v35 = vld [vmem:[#allocation4 + $0x18] sm:$0xff] }
 0x2db   : > { %657 = vperm.xlu0 %877, %v645_v22  }
 0x352   : > { %v653_v25 = vpop.permute.xlu0 %652 }
 0x353   : > { %v660_v28 = vmul.f32 %v653_v25, %v646_v23  ;;  %v661_v29 = vmul.f32 %v653_v25, %v647_v24 }
 0x355   : > { %v664_v32 = vadd.f32 %v660_v28, %v640_v26  ;;  %v665_v33 = vadd.f32 %v661_v29, %v641_v27 }
 0x356   : > { %v658_v34 = vpop.permute.xlu0 %657 }
 0x357   : > { %668 = vst [vmem:[%s1012_s22] sm:$0xff] %v664_v32  ;;  %669 = vst [vmem:[%s1012_s22 + $0x8] sm:$0xff] %v665_v33  ;;  %v662_v37 = vmul.f32 %v658_v34, %v648_v30  ;;  %v663_v38 = vmul.f32 %v658_v34, %v649_v31 }
 0x359   : > { %v666_v39 = vadd.f32 %v662_v37, %v642_v35  ;;  %v667_v40 = vadd.f32 %v663_v38, %v643_v36 }
 0x35b   : > { %670 = vst [vmem:[%s1012_s22 + $0x10] sm:$0xff] %v666_v39  ;;  %671 = vst [vmem:[%s1012_s22 + $0x18] sm:$0xff] %v667_v40 }
 0x35c PF: > { %s18_s9 = sadd.s32 1, %s916_s9   ;;  %s1093_s27 = smov %s908_s29 }
 0x35d   : > { %p15_p9 = scmp.ge.s32.totalorder %s18_s9, 6   ;;  %s1094_s28 = smov %s912_s30 }
 0x35e   : > { %s1095_s29 = smov %s1098_s10  ;;  %s1096_s30 = smov %s1102_s11 }
 0x35f   :  { %17 = sbr.rel (!%p15_p9) target bundleno = 3 (0x3), region = 107 }

</bundles_post_ra>
